<compile_context>
chip_gen: v6e
topology: v6e:2x2x1
jax: 0.10.0
libtpu: 0.0.40
codegen_flags: <defaults>
</compile_context>

<pallas_src>
import functools

import jax
import jax.numpy as jnp
from jax import lax
from jax.experimental import pallas as pl
from jax.experimental.pallas import tpu as pltpu


# ---------------------------------------------------------------------------
# Pallas kernel
# ---------------------------------------------------------------------------
def adapconv_kernel(expand_ref, atw_ref, kx_ref, w_ref, y_ref):
    """One (batch, L-tile) block.

    expand_ref: (C, KK)  bf16 0/1 replication matrix, C = in_planes*k*k, KK = k*k
    atw_ref:    (KK, TL) bf16 compact attention (per-position, per-kernel-tap)
    kx_ref:     (C, TL)  bf16 unfolded patches (natural unfold layout, L on lanes)
    w_ref:      (M, C)   bf16 flattened conv weight
    y_ref:      (M, TL)  f32  lane-dense output block
    """
    # Broadcast the attention over in_planes *inside VMEM* with a tiny MXU
    # matmul (0/1 bf16 products are exact in f32).  This avoids replicating
    # the attention in HBM by an in_planes factor.
    atw_full = jnp.dot(expand_ref[...], atw_ref[...],
                       preferred_element_type=jnp.float32)           # (C, TL)
    # Elementwise re-weighting in f32 (v5e has no bf16 VALU), then drop the
    # product to bf16 as the MXU operand.
    atx = (atw_full * kx_ref[...].astype(jnp.float32)).astype(jnp.bfloat16)
    # (M, C) @ (C, TL) -> (M, TL): output last dim is the L tile (>= 256
    # lanes), so stores are unmasked / lane-dense; no wrapper transpose needed.
    y_ref[...] = jnp.dot(w_ref[...], atx, preferred_element_type=jnp.float32)


def adap_matmul(atw_bkl, kx_bcl, w_mc, *, tile_l=None):
    """atw_bkl: (B, KK, L) bf16; kx_bcl: (B, C, L) bf16; w_mc: (M, C) bf16.

    Returns (B, M, L) f32 with
        y[b, :, l] = w_mc @ (tile(atw[b, :, l], C // KK) * kx[b, :, l]).
    """
    B, KK, L = atw_bkl.shape
    _, C, _ = kx_bcl.shape
    M = w_mc.shape[0]
    assert C % KK == 0

    if tile_l is None:
        # Lane-axis tile: multiple of 256 (fills the 2x256 MXU on v6e/v7x and
        # keeps output stores lane-dense), big enough to amortize the ~0.35us
        # per-grid-step overhead, and small enough that the double-buffered
        # blocks stay far below the scoped VMEM limit even on v7x (64 MiB).
        tile_l = min(2048, pl.cdiv(L, 256) * 256)
    tile_l = max(256, (tile_l // 256) * 256)
    L_pad = pl.cdiv(L, tile_l) * tile_l
    if L_pad != L:
        pad = L_pad - L
        atw_bkl = jnp.pad(atw_bkl, ((0, 0), (0, 0), (0, pad)))
        kx_bcl = jnp.pad(kx_bcl, ((0, 0), (0, 0), (0, pad)))

    # 0/1 replication matrix: row c = ch*KK + kij selects attention row kij
    # (matches torch.nn.functional.unfold's channel-major patch ordering and
    # the .repeat([1, 1, 1, n, 1]) broadcast in the PyTorch module).
    expand = (jnp.arange(C)[:, None] % KK
              == jnp.arange(KK)[None, :]).astype(jnp.bfloat16)       # (C, KK)

    grid = (B, L_pad // tile_l)
    y = pl.pallas_call(
        adapconv_kernel,
        out_shape=jax.ShapeDtypeStruct((B, M, L_pad), jnp.float32),
        grid_spec=pltpu.PrefetchScalarGridSpec(
            num_scalar_prefetch=0,
            grid=grid,
            in_specs=[
                # Constant block index across the whole grid -> the tiny
                # expand/weight tiles are DMA'd once and stay VMEM-resident.
                pl.BlockSpec((C, KK), lambda b, j: (0, 0)),
                # Leading size-1 batch dim squeezed out of the kernel refs.
                pl.BlockSpec((None, KK, tile_l), lambda b, j: (b, 0, j)),
                pl.BlockSpec((None, C, tile_l), lambda b, j: (b, 0, j)),
                pl.BlockSpec((M, C), lambda b, j: (0, 0)),
            ],
            out_specs=pl.BlockSpec((None, M, tile_l), lambda b, j: (b, 0, j)),
        ),
        compiler_params=pltpu.CompilerParams(
            dimension_semantics=("parallel", "parallel")),
    )(expand, atw_bkl, kx_bcl, w_mc)
    if L_pad != L:
        y = y[:, :, :L]
    return y


# ---------------------------------------------------------------------------
# Plain-JAX glue: attention sub-network, unfold, parameter init
# ---------------------------------------------------------------------------
def conv2d(x, w, b=None, stride=1, padding=0):
    y = lax.conv_general_dilated(
        x, w, window_strides=(stride, stride),
        padding=[(padding, padding), (padding, padding)],
        dimension_numbers=("NCHW", "OIHW", "NCHW"))
    if b is not None:
        y = y + b[None, :, None, None]
    return y


def leaky_relu(x, slope=0.1):
    return jnp.where(x >= 0, x, slope * x)


def unet_conv_block(p, x):
    y = leaky_relu(conv2d(x, p["w1"], p["b1"], stride=1, padding=1))
    y = leaky_relu(conv2d(y, p["w2"], p["b2"], stride=1, padding=1))
    return y


def inv_block(p, x, split1, clamp=0.8):
    x1, x2 = x[:, :split1], x[:, split1:]
    y1 = x1 + unet_conv_block(p["F"], x2)
    s = clamp * (jax.nn.sigmoid(unet_conv_block(p["H"], y1)) * 2.0 - 1.0)
    y2 = x2 * jnp.exp(s) + unet_conv_block(p["G"], y1)
    return jnp.concatenate([y1, y2], axis=1)


def unfold(x, k, stride, padding):
    """torch.nn.functional.unfold: (B, C, H, W) -> (B, C*k*k, L)."""
    b, c, H, W = x.shape
    nH = (H + 2 * padding - k) // stride + 1
    nW = (W + 2 * padding - k) // stride + 1
    xp = jnp.pad(x, ((0, 0), (0, 0), (padding, padding), (padding, padding)))
    patches = []
    for ki in range(k):
        for kj in range(k):
            patches.append(
                lax.slice(xp,
                          (0, 0, ki, kj),
                          (b, c, ki + (nH - 1) * stride + 1,
                           kj + (nW - 1) * stride + 1),
                          (1, 1, stride, stride)))          # (b, c, nH, nW)
    p = jnp.stack(patches, axis=2)                           # (b, c, k*k, nH, nW)
    return p.reshape(b, c * k * k, nH * nW)


def _uconv_params(key, o, i, kh=3, kw=3):
    k1, k2, k3, k4 = jax.random.split(key, 4)
    bound1 = 1.0 / (i * kh * kw) ** 0.5
    bound2 = 1.0 / (o * kh * kw) ** 0.5
    return dict(
        w1=jax.random.uniform(k1, (o, i, kh, kw), jnp.float32, -bound1, bound1),
        b1=jax.random.uniform(k2, (o,), jnp.float32, -bound1, bound1),
        w2=jax.random.uniform(k3, (o, o, kh, kw), jnp.float32, -bound2, bound2),
        b2=jax.random.uniform(k4, (o,), jnp.float32, -bound2, bound2),
    )


def init_params(key, in_planes, out_planes, k):
    keys = jax.random.split(key, 6)
    kk = k * k
    split1 = kk // 2
    split2 = kk - split1
    att_bound = 1.0 / (in_planes * k * k) ** 0.5
    w_bound = 1.0 / (in_planes * k * k) ** 0.5
    return dict(
        att_conv_w=jax.random.uniform(keys[0], (kk, in_planes, k, k),
                                      jnp.float32, -att_bound, att_bound),
        att_conv_b=jax.random.uniform(keys[1], (kk,), jnp.float32,
                                      -att_bound, att_bound),
        inv=dict(
            F=_uconv_params(keys[2], split1, split2),   # F: split2 -> split1
            G=_uconv_params(keys[3], split2, split1),   # G: split1 -> split2
            H=_uconv_params(keys[4], split2, split1),   # H: split1 -> split2
        ),
        weight=jax.random.uniform(keys[5], (out_planes, in_planes, k, k),
                                  jnp.float32, -w_bound, w_bound),
    )


# ---------------------------------------------------------------------------
# AdapConv forward
# ---------------------------------------------------------------------------
def adap_conv_forward(params, x, *, kernel_size, stride, padding, out_planes,
                      tile_l=None):
    b, n, H, W = x.shape
    k = kernel_size
    m = out_planes
    kk = k * k
    nH = (H + 2 * padding - k) // stride + 1
    nW = (W + 2 * padding - k) // stride + 1
    L = nH * nW

    # attention1 = Conv2d(n, k*k, k, stride, padding) -> InvBlock(k*k, k*k//2)
    a = conv2d(x, params["att_conv_w"], params["att_conv_b"],
               stride=stride, padding=padding)               # (b, kk, nH, nW)
    a = inv_block(params["inv"], a, split1=kk // 2)          # (b, kk, nH, nW)

    # Compact attention in its natural layout (no transpose, no in_planes-times
    # HBM broadcast).  bf16 at the pallas boundary halves HBM traffic.
    atw_bkl = a.reshape(b, kk, L).astype(jnp.bfloat16)       # (b, kk, L)

    # unfold(x) in its natural layout (b, n*k*k, L): L stays on the lane axis.
    kx_bcl = unfold(x, k, stride, padding).astype(jnp.bfloat16)

    # Flattened conv weight (m, n*k*k) -- already in the (M, C) orientation
    # needed by the lane-dense (M, C) @ (C, TL) matmul.
    w_mc = params["weight"].reshape(m, n * kk).astype(jnp.bfloat16)

    # Pallas hot path: y[b, :, l] = W @ (broadcast_n(atw[b, :, l]) * kx[b, :, l])
    y = adap_matmul(atw_bkl, kx_bcl, w_mc, tile_l=tile_l)    # (b, m, L) f32

    # F.fold with kernel 1 == reshape; kernel output is already (m, L) so no
    # transpose / extra HBM pass is needed here.
    return y.reshape(b, m, nH, nW)


if __name__ == "__main__":
    # Small shapes: B=2, in_planes=4, out_planes=8, H=W=16, k=3, stride=1, pad=1
    B, IN_PLANES, OUT_PLANES, H, W = 2, 4, 8, 16, 16
    K, STRIDE, PAD = 3, 1, 1

    root = jax.random.PRNGKey(0)
    kx_, kp_ = jax.random.split(root)
    x = jax.random.normal(kx_, (B, IN_PLANES, H, W), jnp.float32)
    params = init_params(kp_, IN_PLANES, OUT_PLANES, K)

    fwd = jax.jit(functools.partial(
        adap_conv_forward, kernel_size=K, stride=STRIDE, padding=PAD,
        out_planes=OUT_PLANES))
    y = jax.block_until_ready(fwd(params, x))

    # Reference for the Pallas hot path in plain JAX, mirroring the bf16 casts
    # applied at the kernel boundary.
    a = conv2d(x, params["att_conv_w"], params["att_conv_b"],
               stride=STRIDE, padding=PAD)
    a = inv_block(params["inv"], a, split1=(K * K) // 2)
    atw_c = a.reshape(B, K * K, H * W).astype(jnp.bfloat16).astype(jnp.float32)
    kx_c = unfold(x, K, STRIDE, PAD).astype(jnp.bfloat16).astype(jnp.float32)
    w_c = params["weight"].reshape(OUT_PLANES, IN_PLANES * K * K)
    w_c = w_c.astype(jnp.bfloat16).astype(jnp.float32)
    atx_c = jnp.tile(atw_c, (1, IN_PLANES, 1)) * kx_c
    atx_c = atx_c.astype(jnp.bfloat16).astype(jnp.float32)
    y_ref = jnp.einsum("mc,bcl->bml", w_c, atx_c,
                       preferred_element_type=jnp.float32)
    y_ref = y_ref.reshape(B, OUT_PLANES, H, W)

    assert y.shape == (B, OUT_PLANES, H, W)
    assert jnp.allclose(y, y_ref, atol=1e-3, rtol=1e-3), (
        float(jnp.max(jnp.abs(y - y_ref))))
    print("KERNEL_OK")
</pallas_src>

<mosaic_0001>
module attributes {stable_mosaic.version = 11 : i64} {
  func.func @adapconv_kernel(%arg0: i32, %arg1: i32, %arg2: memref<36x9xbf16, #tpu.memory_space<vmem>>, %arg3: memref<1x9x256xbf16, #tpu.memory_space<vmem>>, %arg4: memref<1x36x256xbf16, #tpu.memory_space<vmem>>, %arg5: memref<8x36xbf16, #tpu.memory_space<vmem>>, %arg6: memref<1x8x256xf32, #tpu.memory_space<vmem>>) attributes {dimension_semantics = [#tpu.dimension_semantics<parallel>, #tpu.dimension_semantics<parallel>], iteration_bounds = array<i64: 2, 1>, scalar_prefetch = 0 : i64, scratch_operands = 0 : i64, tpu.core_type = #tpu.core_type<tc>, window_params = [{pipeline_mode = #tpu.pipeline_mode<synchronous>, transform_indices = @transform_0, window_bounds = array<i64: 36, 9>}, {transform_indices = @transform_1, window_bounds = array<i64: 1, 9, 256>}, {transform_indices = @transform_2, window_bounds = array<i64: 1, 36, 256>}, {pipeline_mode = #tpu.pipeline_mode<synchronous>, transform_indices = @transform_3, window_bounds = array<i64: 8, 36>}, {transform_indices = @transform_4, window_bounds = array<i64: 1, 8, 256>}]} {
    %c0 = arith.constant 0 : index
    %c0_0 = arith.constant 0 : index
    %0 = vector.load %arg2[%c0, %c0_0] : memref<36x9xbf16, #tpu.memory_space<vmem>>, vector<36x9xbf16>
    %c0_1 = arith.constant 0 : index
    %c0_2 = arith.constant 0 : index
    %c0_3 = arith.constant 0 : index
    %1 = vector.load %arg3[%c0_1, %c0_2, %c0_3] : memref<1x9x256xbf16, #tpu.memory_space<vmem>>, vector<1x9x256xbf16>
    %2 = vector.shape_cast %1 : vector<1x9x256xbf16> to vector<9x256xbf16>
    %cst = arith.constant dense<0.000000e+00> : vector<36x256xf32>
    %3 = tpu.matmul %0, %2, %cst {dimension_numbers = #tpu.dot_dimension_numbers<[1], [0], [0], [1], [0, 0, 1, 1], [], []>} : vector<36x9xbf16>, vector<9x256xbf16>, vector<36x256xf32> -> vector<36x256xf32>
    %c0_4 = arith.constant 0 : index
    %c0_5 = arith.constant 0 : index
    %c0_6 = arith.constant 0 : index
    %4 = vector.load %arg4[%c0_4, %c0_5, %c0_6] : memref<1x36x256xbf16, #tpu.memory_space<vmem>>, vector<1x36x256xbf16>
    %5 = vector.shape_cast %4 : vector<1x36x256xbf16> to vector<36x256xbf16>
    %6 = arith.extf %5 : vector<36x256xbf16> to vector<36x256xf32>
    %7 = arith.mulf %3, %6 : vector<36x256xf32>
    %8 = arith.truncf %7 : vector<36x256xf32> to vector<36x256xbf16>
    %c0_7 = arith.constant 0 : index
    %c0_8 = arith.constant 0 : index
    %9 = vector.load %arg5[%c0_7, %c0_8] : memref<8x36xbf16, #tpu.memory_space<vmem>>, vector<8x36xbf16>
    %cst_9 = arith.constant dense<0.000000e+00> : vector<8x256xf32>
    %10 = tpu.matmul %9, %8, %cst_9 {dimension_numbers = #tpu.dot_dimension_numbers<[1], [0], [0], [1], [0, 0, 1, 1], [], []>} : vector<8x36xbf16>, vector<36x256xbf16>, vector<8x256xf32> -> vector<8x256xf32>
    %c0_10 = arith.constant 0 : index
    %c0_11 = arith.constant 0 : index
    %c0_12 = arith.constant 0 : index
    %11 = vector.load %arg6[%c0_10, %c0_11, %c0_12] : memref<1x8x256xf32, #tpu.memory_space<vmem>>, vector<1x8x256xf32>
    %12 = vector.shape_cast %11 : vector<1x8x256xf32> to vector<8x256xf32>
    %13 = vector.shape_cast %10 : vector<8x256xf32> to vector<1x8x256xf32>
    tpu.vector_store %arg6[%c0_10, %c0_11, %c0_12], %13 {strides = array<i32>} : memref<1x8x256xf32, #tpu.memory_space<vmem>>, vector<1x8x256xf32>,
    return
  }
  func.func @transform_0(%arg0: i32, %arg1: i32) -> (i32, i32) {
    %c0_i32 = arith.constant 0 : i32
    %c0_i32_0 = arith.constant 0 : i32
    %c0_i32_1 = arith.constant 0 : i32
    return %c0_i32, %c0_i32_0 : i32, i32
  }
  func.func @transform_1(%arg0: i32, %arg1: i32) -> (i32, i32, i32) {
    %c0_i32 = arith.constant 0 : i32
    %c0_i32_0 = arith.constant 0 : i32
    return %arg0, %c0_i32, %arg1 : i32, i32, i32
  }
  func.func @transform_2(%arg0: i32, %arg1: i32) -> (i32, i32, i32) {
    %c0_i32 = arith.constant 0 : i32
    %c0_i32_0 = arith.constant 0 : i32
    return %arg0, %c0_i32, %arg1 : i32, i32, i32
  }
  func.func @transform_3(%arg0: i32, %arg1: i32) -> (i32, i32) {
    %c0_i32 = arith.constant 0 : i32
    %c0_i32_0 = arith.constant 0 : i32
    %c0_i32_1 = arith.constant 0 : i32
    return %c0_i32, %c0_i32_0 : i32, i32
  }
  func.func @transform_4(%arg0: i32, %arg1: i32) -> (i32, i32, i32) {
    %c0_i32 = arith.constant 0 : i32
    %c0_i32_0 = arith.constant 0 : i32
    return %arg0, %c0_i32, %arg1 : i32, i32, i32
  }
}

</mosaic_0001>

<bundles_post_ra>
// kernel: adap_conv_forward.1
= control target key start
LH: loop header
LB: loop body
LE: loop exit
PB: predicated region body
PF: predicated region fallthrough
CT: control target
= control target key end

     0   :  { %s682_s15 = smov 0   ;;  %s684_s16 = smov 0   ;;  %s738_s0 = inlined_call_operand.vmem [shape: bf16[36,9], index: 0, kind: input, shape index: {}]   ;;  %s739_s1 = inlined_call_operand.vmem [shape: bf16[2,9,256], index: 1, kind: input, shape index: {}]   ;;  %s740_s2 = inlined_call_operand.vmem [shape: bf16[2,36,256], index: 2, kind: input, shape index: {}]   ;;  %s741_s3 = inlined_call_operand.vmem [shape: bf16[8,36], index: 3, kind: input, shape index: {}]   ;;  %s742_s4 = inlined_call_operand.vmem [shape: f32[2,8,256], index: 4, kind: output, shape index: {}]  }
   0x1   :  { %s686_s17 = smov 0  }
   0x2 LB: > { %s26_s18 = sadd.s32 1, %s649_s16  ;;  %p578_p0 = scmp.ge.s32.totalorder %s653_s17, 1  ;;  %s653_s17 = sphi %s686_s17, %s14_s17   ;;  %s649_s16 = sphi %s684_s16, %s744_s16   ;;  %s645_s15 = sphi %s682_s15, %s743_s15  }
   0x3   : > { %p28_p1 = scmp.ge.s32.totalorder %s26_s18, 2  ;;  %p200_p2 = scmp.lt.s32.totalorder %s653_s17, 3 }
   0x5   : > { %s746_s18 = smov (%p28_p1, %s26_s18), 0  ;;  %p201_p3 = pnand %p578_p0, %p200_p2 }
   0x6   : > { %p244_p4 = scmp.lt.s32.totalorder (!%p201_p3), %s645_s15, 1 }
   0x7   : > { %204 = sbr.rel (%p201_p3) target bundleno = 448 (0x1c0), region = 36 }
   0xc   : > { %vm312_vm0 = vcmask 1043456   ;;  %vm313_vm1 = vcmask 1044480   ;;  %v655_v0 = vmov 0   ;;  %s748_s15 = smov (!%p244_p4, %s645_s15), 1  ;;  %v656_v1 = vmov 65535   ;;  %v628_v8 = vld [vmem:[%s738_s0] sm:$0xff]  }
   0xd   : > { %354 = vmatprep.mubr.bf16.mxu0 %v655_v0  ;;  %458 = vmatprep.mubr.bf16.mxu1 %v655_v0  ;;  %v314_v2 = vsel %vm312_vm0, 4294967295, %v656_v1  ;;  %s596_s19 = sshll.u32 %s748_s15, 4  ;;  %vm302_vm2 = vcmask 72704   ;;  %v629_v9 = vld [vmem:[%s738_s0 + $0x8] sm:$0xff]   ;;  %s598_s29 = smul.u32 40, %s748_s15  ;;  %vm419_vm3 = vcmask 1041408  }
   0xe   : > { %s251_s22 = scalar_lea.vmem %s739_s1, %s596_s19  ;;  %v315_v3 = vsel %vm313_vm1, %v314_v2, 0  ;;  %v630_v10 = vld [vmem:[%s738_s0 + $0x10] ss:$0 sps:$4 sm:$0x33]   ;;  %v414_v55 = vld [vmem:[%s741_s3] sm:$0xf]  ;;  %s271_s11 = scalar_lea.vmem %s742_s4, %s596_s19 }
   0xf   : > { %v625_v4 = vld [vmem:[%s251_s22 + $0x4] ss:$8 sps:$4 sm:$0x1f]   ;;  %v627_v5 = vld [vmem:[%s251_s22] ss:$8 sps:$4 sm:$0x1f]   ;;  %s261_s6 = scalar_lea.vmem %s740_s2, %s598_s29 }
  0x10   : > { %v320_v6 = vand.u32 %v625_v4, %v315_v3  ;;  %v317_v7 = vand.u32 %v627_v5, %v315_v3  ;;  %v387_v17 = vld [vmem:[%s261_s6 + $0x20] sm:$0x33]  ;;  %v386_v20 = vld [vmem:[%s261_s6 + $0x18] sm:$0xff]  ;;  %v385_v24 = vld [vmem:[%s261_s6 + $0x10] sm:$0xff]  ;;  %vm415_vm4 = vcmask 293888  }
  0x11   : > { %v396_v19 = vunpack.c.l.bf16 %v387_v17  ;;  %v395_v22 = vunpack.c.h.bf16 %v386_v20  ;;  %v397_v23 = vunpack.c.h.bf16 %v387_v17  ;;  %v393_v26 = vunpack.c.h.bf16 %v385_v24  ;;  %v384_v28 = vld [vmem:[%s261_s6 + $0x8] sm:$0xff]  ;;  %v383_v35 = vld [vmem:[%s261_s6] sm:$0xff] }
  0x12   : > { %336 = vmatprep.subr.bf16.mxu0 %v320_v6  ;;  %v394_v29 = vunpack.c.l.bf16 %v386_v20  ;;  %v391_v31 = vunpack.c.h.bf16 %v384_v28  ;;  %v392_v36 = vunpack.c.l.bf16 %v385_v24  ;;  %v389_v38 = vunpack.c.h.bf16 %v383_v35 }
  0x13   : > { %337 = vmatpush1.bf16.msra.mxu0 %v317_v7  ;;  %v390_v41 = vunpack.c.l.bf16 %v384_v28  ;;  %v388_v47 = vunpack.c.l.bf16 %v383_v35 }
  0x16   : > { %589 = vmatmul.mubr.msk.bf16.vlgmr.msra.gmra.mxu0 %vm302_vm2, %v628_v8 }
  0x17   : > { %364 = vmatprep.mubr.bf16.mxu0 %v655_v0 }
  0x1e   : > { %590 = vmatmul.mubr.msk.bf16.gmra.mxu0 %vm302_vm2, %v629_v9 }
  0x1f   : > { %374 = vmatprep.mubr.bf16.mxu0 %v655_v0 }
  0x26   : > { %591 = vmatmul.mubr.msk.bf16.gmra.mxu0 %vm302_vm2, %v630_v10 }
  0xd6   : > { %v356_v11 = vpop.f32.mrf.mxu0 }
  0xd7   : > { %v398_v53 = vmul.f32 %v388_v47, %v356_v11 }
  0xd8   : > { %v358_v12 = vpop.f32.mrf.mxu0 }
  0xd9   : > { %v399_v49 = vmul.f32 %v389_v38, %v358_v12 }
  0xda   : > { %v360_v13 = vpop.f32.mrf.mxu0 }
  0xdb   : > { %v400_v50 = vmul.f32 %v390_v41, %v360_v13 }
  0xdc   : > { %v362_v14 = vpop.f32.mrf.mxu0 }
  0xdd   : > { %v401_v44 = vmul.f32 %v391_v31, %v362_v14  ;;  %v408_v54 = vpack.c.bf16 %v400_v50, %v398_v53 }
  0xde   : > { %v366_v15 = vpop.f32.mrf.mxu0 }
  0xdf   : > { %v402_v48 = vmul.f32 %v392_v36, %v366_v15  ;;  %v409_v52 = vpack.c.bf16 %v401_v44, %v399_v49 }
  0xe0   : > { %v368_v16 = vpop.f32.mrf.mxu0 }
  0xe1   : > { %v403_v39 = vmul.f32 %v393_v26, %v368_v16 }
  0xe2   : > { %v370_v18 = vpop.f32.mrf.mxu0 }
  0xe3   : > { %v404_v42 = vmul.f32 %v394_v29, %v370_v18 }
  0xe4   : > { %v372_v21 = vpop.f32.mrf.mxu0 }
  0xe5   : > { %v405_v32 = vmul.f32 %v395_v22, %v372_v21  ;;  %v410_v51 = vpack.c.bf16 %v404_v42, %v402_v48 }
  0xe6   : > { %v376_v25 = vpop.f32.mrf.mxu0 }
  0xe7   : > { %v406_v27 = vmul.f32 %v396_v19, %v376_v25  ;;  %v411_v45 = vpack.c.bf16 %v405_v32, %v403_v39 }
  0xe8   : > { %v378_v30 = vpop.f32.mrf.mxu0 }
  0xe9   : > { %v412_v33 = vpack.c.bf16 %v406_v27, %v406_v27  ;;  %v407_v34 = vmul.f32 %v397_v23, %v378_v30 }
  0xea   : > { %v380_v37 = vpop.f32.mrf.mxu0 }
  0xeb   : > { %v413_v40 = vpack.c.bf16 %v407_v34, %v407_v34  ;;  %v421_v46 = vsel %vm419_vm3, %v412_v33, 0 }
  0xec   : > { %v381_v43 = vpop.f32.mrf.mxu0 }
  0xed   : > { %592 = vmatprep.subr.msk.bf16.mxu1 %vm419_vm3, %v413_v40 }
  0xee   : > { %437 = vmatpush1.bf16.msra.mxu1 %v421_v46 }
  0xef   : > { %438 = vmatprep.subr.bf16.mxu1 %v411_v45 }
  0xf2   : > { %439 = vmatpush1.bf16.msra.mxu1 %v410_v51 }
  0xf3   : > { %440 = vmatprep.subr.bf16.mxu1 %v409_v52 }
  0xf6   : > { %441 = vmatpush1.bf16.msra.mxu1 %v408_v54 }
  0xf9   : > { %593 = vmatmul.mubr.msk.bf16.vlgmr.msra.gmra.mxu1 %vm415_vm4, %v414_v55 }
 0x1b9   : > { %v460_v56 = vpop.f32.mrf.mxu1 }
 0x1ba   : > { %467 = vst [vmem:[%s271_s11] sm:$0xff] %v460_v56 }
 0x1bb   : > { %v462_v57 = vpop.f32.mrf.mxu1 }
 0x1bc   : > { %468 = vst [vmem:[%s271_s11 + $0x8] sm:$0xff] %v462_v57 }
 0x1bd   : > { %v464_v58 = vpop.f32.mrf.mxu1 }
 0x1bf   : > { %v465_v59 = vpop.f32.mrf.mxu1 }
 0x1c0 PF: > { %s14_s17 = sadd.s32 1, %s653_s17   ;;  %s743_s15 = smov %s649_s16 }
 0x1c1   : > { %p11_p5 = scmp.ge.s32.totalorder %s14_s17, 4   ;;  %s744_s16 = smov %s746_s18 }
 0x1c3   :  { %13 = sbr.rel (!%p11_p5) target bundleno = 2 (0x2), region = 69 }

</bundles_post_ra>
